<compile_context>
chip_gen: v5e
topology: v5e:2x2
jax: 0.10.0
libtpu: 0.0.40
codegen_flags: <defaults>
</compile_context>

<pallas_src>
import functools

import numpy as np
import jax
import jax.numpy as jnp
from jax import lax
from jax.experimental import pallas as pl
from jax.experimental.pallas import tpu as pltpu


def _fused_conv_kernel(x_ref, w_ref, b_ref, o_ref, acc_ref, *, kH, kW, Wp, L):
    """One grid step: one batch element x one C_in tile.

    x_ref : (1, ctile, Hp*Wp)   bf16  flattened padded activations
    w_ref : (kH*kW, C_out, ctile) bf16 per-tap weight matrices
    b_ref : (C_out, 1)          f32
    o_ref : (1, C_out, L)       out dtype (NCHW-flat, lane-dense)
    acc_ref: (C_out, L)         f32 VMEM accumulator (resident across C_in tiles)
    """
    k = pl.program_id(1)

    @pl.when(k == 0)
    def _init():
        # Fold the bias into the accumulator init (one broadcast per output block).
        acc_ref[...] = jnp.broadcast_to(b_ref[...], acc_ref.shape)

    acc = acc_ref[...]
    # Static unrolled loop over the kH*kW taps: each tap is a contiguous
    # lane-slice of the flattened image and a small MXU matmul.
    for kh in range(kH):
        for kw in range(kW):
            off = kh * Wp + kw
            x_sl = x_ref[0, :, off:off + L]        # (ctile, L)   bf16
            w_t = w_ref[kh * kW + kw]              # (C_out, ctile) bf16
            acc = acc + jnp.dot(w_t, x_sl, preferred_element_type=jnp.float32)
    acc_ref[...] = acc

    @pl.when(k == pl.num_programs(1) - 1)
    def _finalize():
        o_ref[0] = acc_ref[...].astype(o_ref.dtype)


def conv_layer_forward(x_nchw, weight, bias, stride, *, k_tile_max=512):
    """Forward of ConvLayer: ReflectionPad2d(floor(k/2)) -> Conv2d(stride)."""
    N, C_in, H, W = x_nchw.shape
    C_out, _, kH, kW = weight.shape
    # Module uses a single (square) kernel_size; pad follows the PyTorch module.
    pad = int(np.floor(kH / 2))

    # Reflection padding in NCHW (identical semantics to nn.ReflectionPad2d).
    x_pad = jnp.pad(x_nchw, ((0, 0), (0, 0), (pad, pad), (pad, pad)), mode="reflect")
    Hp, Wp = H + 2 * pad, W + 2 * pad
    S = Hp * Wp

    # Stride-1 "valid" conv extents; stride is applied by subsampling afterwards.
    Hv = Hp - kH + 1
    Wv = Wp - kW + 1
    L = (Hv - 1) * Wp + Wv     # flattened output extent the kernel computes

    # Free metadata reshape + bf16 cast: activations are streamed exactly once.
    x_flat = x_pad.reshape(N, C_in, S).astype(jnp.bfloat16)
    # PyTorch weight (C_out, C_in, kH, kW) -> (kH*kW, C_out, C_in) per-tap mats.
    w_taps = jnp.transpose(weight, (2, 3, 0, 1)).reshape(kH * kW, C_out, C_in)
    w_taps = w_taps.astype(jnp.bfloat16)
    b_col = bias.reshape(C_out, 1).astype(jnp.float32)

    # Tile the C_in contraction only when it is large (keeps VMEM bounded,
    # e.g. on v7x's smaller VMEM); tiles must be 128-multiples per layout rules.
    ctile = C_in
    if C_in > k_tile_max:
        for cand in (512, 256, 128):
            if C_in % cand == 0:
                ctile = cand
                break
    num_k = C_in // ctile

    kernel = functools.partial(_fused_conv_kernel, kH=kH, kW=kW, Wp=Wp, L=L)

    out_flat = pl.pallas_call(
        kernel,
        out_shape=jax.ShapeDtypeStruct((N, C_out, L), x_nchw.dtype),
        grid_spec=pltpu.PrefetchScalarGridSpec(
            num_scalar_prefetch=0,
            grid=(N, num_k),
            in_specs=[
                # Whole padded (flattened) image for this batch / C_in tile.
                pl.BlockSpec((1, ctile, S), lambda n, k: (n, k, 0)),
                # Per-tap weight slabs for this C_in tile (resident across n).
                pl.BlockSpec((kH * kW, C_out, ctile), lambda n, k: (0, 0, k)),
                # Bias column (resident).
                pl.BlockSpec((C_out, 1), lambda n, k: (0, 0)),
            ],
            # Output block is independent of k -> stays resident while we
            # accumulate over the C_in tiles.
            out_specs=pl.BlockSpec((1, C_out, L), lambda n, k: (n, 0, 0)),
            scratch_shapes=[pltpu.VMEM((C_out, L), jnp.float32)],
        ),
        compiler_params=pltpu.CompilerParams(
            dimension_semantics=("parallel", "arbitrary"),
            vmem_limit_bytes=32 * 1024 * 1024,
        ),
    )(x_flat, w_taps, b_col)

    # (N, C_out, L) -> (N, C_out, Hv, Wp) -> drop the kW-1 wrap columns -> stride.
    out_full = jnp.pad(out_flat, ((0, 0), (0, 0), (0, Hv * Wp - L)))
    out_full = out_full.reshape(N, C_out, Hv, Wp)[:, :, :, :Wv]
    return out_full[:, :, ::stride, ::stride]


if __name__ == "__main__":
    # Small shapes consistent with the module: NCHW input, 3x3 conv, stride 1.
    N, C_in, H, W = 2, 4, 16, 16
    C_out, kernel_size, stride = 8, 3, 1

    key = jax.random.PRNGKey(0)
    kx, kw, kb = jax.random.split(key, 3)

    x = jax.random.normal(kx, (N, C_in, H, W), dtype=jnp.float32)

    # Deterministic parameter init (Kaiming-uniform-like bounds, as in nn.Conv2d).
    fan_in = C_in * kernel_size * kernel_size
    bound = 1.0 / np.sqrt(fan_in)
    weight = jax.random.uniform(
        kw, (C_out, C_in, kernel_size, kernel_size),
        minval=-bound, maxval=bound, dtype=jnp.float32)
    bias = jax.random.uniform(kb, (C_out,), minval=-bound, maxval=bound,
                              dtype=jnp.float32)

    out = conv_layer_forward(x, weight, bias, stride)
    out = jax.block_until_ready(out)

    # Reference: XLA conv on the reflection-padded input (f32).
    pad = kernel_size // 2
    x_pad = jnp.pad(x, ((0, 0), (0, 0), (pad, pad), (pad, pad)), mode="reflect")
    ref = lax.conv_general_dilated(
        x_pad, weight, window_strides=(stride, stride), padding="VALID",
        dimension_numbers=("NCHW", "OIHW", "NCHW")) + bias[None, :, None, None]
    ref = jax.block_until_ready(ref)

    H_out = (H + 2 * pad - kernel_size) // stride + 1
    W_out = (W + 2 * pad - kernel_size) // stride + 1
    assert out.shape == (N, C_out, H_out, W_out), out.shape
    # bf16 operands on the MXU (f32 accumulate) -> loosened tolerance vs f32 ref.
    np.testing.assert_allclose(np.asarray(out), np.asarray(ref), rtol=2e-2, atol=2e-2)
    print("KERNEL_OK")
</pallas_src>

<mosaic_0001>
module attributes {stable_mosaic.version = 11 : i64} {
  func.func @_fused_conv_kernel(%arg0: i32, %arg1: i32, %arg2: memref<1x4x324xbf16, #tpu.memory_space<vmem>>, %arg3: memref<9x8x4xbf16, #tpu.memory_space<vmem>>, %arg4: memref<8x1xf32, #tpu.memory_space<vmem>>, %arg5: memref<1x8x286xf32, #tpu.memory_space<vmem>>, %arg6: memref<8x286xf32, #tpu.memory_space<vmem>>) attributes {dimension_semantics = [#tpu.dimension_semantics<parallel>, #tpu.dimension_semantics<arbitrary>], iteration_bounds = array<i64: 2, 1>, scalar_prefetch = 0 : i64, scratch_operands = 1 : i64, tpu.core_type = #tpu.core_type<tc>, window_params = [{transform_indices = @transform_0, window_bounds = array<i64: 1, 4, 324>}, {transform_indices = @transform_1, window_bounds = array<i64: 9, 8, 4>}, {pipeline_mode = #tpu.pipeline_mode<synchronous>, transform_indices = @transform_2, window_bounds = array<i64: 8, 1>}, {transform_indices = @transform_3, window_bounds = array<i64: 1, 8, 286>}]} {
    %c0_i32 = arith.constant 0 : i32
    %0 = arith.cmpi eq, %arg1, %c0_i32 : i32
    %1 = arith.extui %0 : i1 to i32
    %c0_i32_0 = arith.constant 0 : i32
    %2 = arith.cmpi ne, %1, %c0_i32_0 : i32
    scf.if %2 {
      %c0_54 = arith.constant 0 : index
      %c0_55 = arith.constant 0 : index
      %62 = vector.load %arg4[%c0_54, %c0_55] : memref<8x1xf32, #tpu.memory_space<vmem>>, vector<8x1xf32>
      %63 = vector.shape_cast %62 : vector<8x1xf32> to vector<8x1xf32>
      %64 = vector.broadcast %63 : vector<8x1xf32> to vector<8x286xf32>
      %c0_56 = arith.constant 0 : index
      %c0_57 = arith.constant 0 : index
      %65 = vector.load %arg6[%c0_56, %c0_57] : memref<8x286xf32, #tpu.memory_space<vmem>>, vector<8x286xf32>
      tpu.vector_store %arg6[%c0_56, %c0_57], %64 {strides = array<i32>} : memref<8x286xf32, #tpu.memory_space<vmem>>, vector<8x286xf32>,
    } else {
    }
    %c0 = arith.constant 0 : index
    %c0_1 = arith.constant 0 : index
    %3 = vector.load %arg6[%c0, %c0_1] : memref<8x286xf32, #tpu.memory_space<vmem>>, vector<8x286xf32>
    %c0_2 = arith.constant 0 : index
    %c0_3 = arith.constant 0 : index
    %c0_4 = arith.constant 0 : index
    %4 = vector.load %arg2[%c0_2, %c0_3, %c0_4] : memref<1x4x324xbf16, #tpu.memory_space<vmem>>, vector<1x4x286xbf16>
    %5 = vector.shape_cast %4 : vector<1x4x286xbf16> to vector<4x286xbf16>
    %c0_5 = arith.constant 0 : index
    %c0_6 = arith.constant 0 : index
    %c0_7 = arith.constant 0 : index
    %6 = vector.load %arg3[%c0_5, %c0_6, %c0_7] : memref<9x8x4xbf16, #tpu.memory_space<vmem>>, vector<1x8x4xbf16>
    %7 = vector.shape_cast %6 : vector<1x8x4xbf16> to vector<8x4xbf16>
    %cst = arith.constant dense<0.000000e+00> : vector<8x286xf32>
    %8 = tpu.matmul %7, %5, %cst {dimension_numbers = #tpu.dot_dimension_numbers<[1], [0], [0], [1], [0, 0, 1, 1], [], []>} : vector<8x4xbf16>, vector<4x286xbf16>, vector<8x286xf32> -> vector<8x286xf32>
    %9 = arith.addf %3, %8 : vector<8x286xf32>
    %c0_8 = arith.constant 0 : index
    %c0_9 = arith.constant 0 : index
    %c1 = arith.constant 1 : index
    %10 = vector.load %arg2[%c0_8, %c0_9, %c1] : memref<1x4x324xbf16, #tpu.memory_space<vmem>>, vector<1x4x286xbf16>
    %11 = vector.shape_cast %10 : vector<1x4x286xbf16> to vector<4x286xbf16>
    %c1_10 = arith.constant 1 : index
    %c0_11 = arith.constant 0 : index
    %c0_12 = arith.constant 0 : index
    %12 = vector.load %arg3[%c1_10, %c0_11, %c0_12] : memref<9x8x4xbf16, #tpu.memory_space<vmem>>, vector<1x8x4xbf16>
    %13 = vector.shape_cast %12 : vector<1x8x4xbf16> to vector<8x4xbf16>
    %cst_13 = arith.constant dense<0.000000e+00> : vector<8x286xf32>
    %14 = tpu.matmul %13, %11, %cst_13 {dimension_numbers = #tpu.dot_dimension_numbers<[1], [0], [0], [1], [0, 0, 1, 1], [], []>} : vector<8x4xbf16>, vector<4x286xbf16>, vector<8x286xf32> -> vector<8x286xf32>
    %15 = arith.addf %9, %14 : vector<8x286xf32>
    %c0_14 = arith.constant 0 : index
    %c0_15 = arith.constant 0 : index
    %c2 = arith.constant 2 : index
    %16 = vector.load %arg2[%c0_14, %c0_15, %c2] : memref<1x4x324xbf16, #tpu.memory_space<vmem>>, vector<1x4x286xbf16>
    %17 = vector.shape_cast %16 : vector<1x4x286xbf16> to vector<4x286xbf16>
    %c2_16 = arith.constant 2 : index
    %c0_17 = arith.constant 0 : index
    %c0_18 = arith.constant 0 : index
    %18 = vector.load %arg3[%c2_16, %c0_17, %c0_18] : memref<9x8x4xbf16, #tpu.memory_space<vmem>>, vector<1x8x4xbf16>
    %19 = vector.shape_cast %18 : vector<1x8x4xbf16> to vector<8x4xbf16>
    %cst_19 = arith.constant dense<0.000000e+00> : vector<8x286xf32>
    %20 = tpu.matmul %19, %17, %cst_19 {dimension_numbers = #tpu.dot_dimension_numbers<[1], [0], [0], [1], [0, 0, 1, 1], [], []>} : vector<8x4xbf16>, vector<4x286xbf16>, vector<8x286xf32> -> vector<8x286xf32>
    %21 = arith.addf %15, %20 : vector<8x286xf32>
    %c0_20 = arith.constant 0 : index
    %c0_21 = arith.constant 0 : index
    %c18 = arith.constant 18 : index
    %22 = vector.load %arg2[%c0_20, %c0_21, %c18] : memref<1x4x324xbf16, #tpu.memory_space<vmem>>, vector<1x4x286xbf16>
    %23 = vector.shape_cast %22 : vector<1x4x286xbf16> to vector<4x286xbf16>
    %c3 = arith.constant 3 : index
    %c0_22 = arith.constant 0 : index
    %c0_23 = arith.constant 0 : index
    %24 = vector.load %arg3[%c3, %c0_22, %c0_23] : memref<9x8x4xbf16, #tpu.memory_space<vmem>>, vector<1x8x4xbf16>
    %25 = vector.shape_cast %24 : vector<1x8x4xbf16> to vector<8x4xbf16>
    %cst_24 = arith.constant dense<0.000000e+00> : vector<8x286xf32>
    %26 = tpu.matmul %25, %23, %cst_24 {dimension_numbers = #tpu.dot_dimension_numbers<[1], [0], [0], [1], [0, 0, 1, 1], [], []>} : vector<8x4xbf16>, vector<4x286xbf16>, vector<8x286xf32> -> vector<8x286xf32>
    %27 = arith.addf %21, %26 : vector<8x286xf32>
    %c0_25 = arith.constant 0 : index
    %c0_26 = arith.constant 0 : index
    %c19 = arith.constant 19 : index
    %28 = vector.load %arg2[%c0_25, %c0_26, %c19] : memref<1x4x324xbf16, #tpu.memory_space<vmem>>, vector<1x4x286xbf16>
    %29 = vector.shape_cast %28 : vector<1x4x286xbf16> to vector<4x286xbf16>
    %c4 = arith.constant 4 : index
    %c0_27 = arith.constant 0 : index
    %c0_28 = arith.constant 0 : index
    %30 = vector.load %arg3[%c4, %c0_27, %c0_28] : memref<9x8x4xbf16, #tpu.memory_space<vmem>>, vector<1x8x4xbf16>
    %31 = vector.shape_cast %30 : vector<1x8x4xbf16> to vector<8x4xbf16>
    %cst_29 = arith.constant dense<0.000000e+00> : vector<8x286xf32>
    %32 = tpu.matmul %31, %29, %cst_29 {dimension_numbers = #tpu.dot_dimension_numbers<[1], [0], [0], [1], [0, 0, 1, 1], [], []>} : vector<8x4xbf16>, vector<4x286xbf16>, vector<8x286xf32> -> vector<8x286xf32>
    %33 = arith.addf %27, %32 : vector<8x286xf32>
    %c0_30 = arith.constant 0 : index
    %c0_31 = arith.constant 0 : index
    %c20 = arith.constant 20 : index
    %34 = vector.load %arg2[%c0_30, %c0_31, %c20] : memref<1x4x324xbf16, #tpu.memory_space<vmem>>, vector<1x4x286xbf16>
    %35 = vector.shape_cast %34 : vector<1x4x286xbf16> to vector<4x286xbf16>
    %c5 = arith.constant 5 : index
    %c0_32 = arith.constant 0 : index
    %c0_33 = arith.constant 0 : index
    %36 = vector.load %arg3[%c5, %c0_32, %c0_33] : memref<9x8x4xbf16, #tpu.memory_space<vmem>>, vector<1x8x4xbf16>
    %37 = vector.shape_cast %36 : vector<1x8x4xbf16> to vector<8x4xbf16>
    %cst_34 = arith.constant dense<0.000000e+00> : vector<8x286xf32>
    %38 = tpu.matmul %37, %35, %cst_34 {dimension_numbers = #tpu.dot_dimension_numbers<[1], [0], [0], [1], [0, 0, 1, 1], [], []>} : vector<8x4xbf16>, vector<4x286xbf16>, vector<8x286xf32> -> vector<8x286xf32>
    %39 = arith.addf %33, %38 : vector<8x286xf32>
    %c0_35 = arith.constant 0 : index
    %c0_36 = arith.constant 0 : index
    %c36 = arith.constant 36 : index
    %40 = vector.load %arg2[%c0_35, %c0_36, %c36] : memref<1x4x324xbf16, #tpu.memory_space<vmem>>, vector<1x4x286xbf16>
    %41 = vector.shape_cast %40 : vector<1x4x286xbf16> to vector<4x286xbf16>
    %c6 = arith.constant 6 : index
    %c0_37 = arith.constant 0 : index
    %c0_38 = arith.constant 0 : index
    %42 = vector.load %arg3[%c6, %c0_37, %c0_38] : memref<9x8x4xbf16, #tpu.memory_space<vmem>>, vector<1x8x4xbf16>
    %43 = vector.shape_cast %42 : vector<1x8x4xbf16> to vector<8x4xbf16>
    %cst_39 = arith.constant dense<0.000000e+00> : vector<8x286xf32>
    %44 = tpu.matmul %43, %41, %cst_39 {dimension_numbers = #tpu.dot_dimension_numbers<[1], [0], [0], [1], [0, 0, 1, 1], [], []>} : vector<8x4xbf16>, vector<4x286xbf16>, vector<8x286xf32> -> vector<8x286xf32>
    %45 = arith.addf %39, %44 : vector<8x286xf32>
    %c0_40 = arith.constant 0 : index
    %c0_41 = arith.constant 0 : index
    %c37 = arith.constant 37 : index
    %46 = vector.load %arg2[%c0_40, %c0_41, %c37] : memref<1x4x324xbf16, #tpu.memory_space<vmem>>, vector<1x4x286xbf16>
    %47 = vector.shape_cast %46 : vector<1x4x286xbf16> to vector<4x286xbf16>
    %c7 = arith.constant 7 : index
    %c0_42 = arith.constant 0 : index
    %c0_43 = arith.constant 0 : index
    %48 = vector.load %arg3[%c7, %c0_42, %c0_43] : memref<9x8x4xbf16, #tpu.memory_space<vmem>>, vector<1x8x4xbf16>
    %49 = vector.shape_cast %48 : vector<1x8x4xbf16> to vector<8x4xbf16>
    %cst_44 = arith.constant dense<0.000000e+00> : vector<8x286xf32>
    %50 = tpu.matmul %49, %47, %cst_44 {dimension_numbers = #tpu.dot_dimension_numbers<[1], [0], [0], [1], [0, 0, 1, 1], [], []>} : vector<8x4xbf16>, vector<4x286xbf16>, vector<8x286xf32> -> vector<8x286xf32>
    %51 = arith.addf %45, %50 : vector<8x286xf32>
    %c0_45 = arith.constant 0 : index
    %c0_46 = arith.constant 0 : index
    %c38 = arith.constant 38 : index
    %52 = vector.load %arg2[%c0_45, %c0_46, %c38] : memref<1x4x324xbf16, #tpu.memory_space<vmem>>, vector<1x4x286xbf16>
    %53 = vector.shape_cast %52 : vector<1x4x286xbf16> to vector<4x286xbf16>
    %c8 = arith.constant 8 : index
    %c0_47 = arith.constant 0 : index
    %c0_48 = arith.constant 0 : index
    %54 = vector.load %arg3[%c8, %c0_47, %c0_48] : memref<9x8x4xbf16, #tpu.memory_space<vmem>>, vector<1x8x4xbf16>
    %55 = vector.shape_cast %54 : vector<1x8x4xbf16> to vector<8x4xbf16>
    %cst_49 = arith.constant dense<0.000000e+00> : vector<8x286xf32>
    %56 = tpu.matmul %55, %53, %cst_49 {dimension_numbers = #tpu.dot_dimension_numbers<[1], [0], [0], [1], [0, 0, 1, 1], [], []>} : vector<8x4xbf16>, vector<4x286xbf16>, vector<8x286xf32> -> vector<8x286xf32>
    %57 = arith.addf %51, %56 : vector<8x286xf32>
    %c0_50 = arith.constant 0 : index
    %c0_51 = arith.constant 0 : index
    %58 = vector.load %arg6[%c0_50, %c0_51] : memref<8x286xf32, #tpu.memory_space<vmem>>, vector<8x286xf32>
    tpu.vector_store %arg6[%c0_50, %c0_51], %57 {strides = array<i32>} : memref<8x286xf32, #tpu.memory_space<vmem>>, vector<8x286xf32>,
    %c0_i32_52 = arith.constant 0 : i32
    %59 = arith.cmpi eq, %arg1, %c0_i32_52 : i32
    %60 = arith.extui %59 : i1 to i32
    %c0_i32_53 = arith.constant 0 : i32
    %61 = arith.cmpi ne, %60, %c0_i32_53 : i32
    scf.if %61 {
      %c0_54 = arith.constant 0 : index
      %c0_55 = arith.constant 0 : index
      %62 = vector.load %arg6[%c0_54, %c0_55] : memref<8x286xf32, #tpu.memory_space<vmem>>, vector<8x286xf32>
      %c0_56 = arith.constant 0 : index
      %c0_57 = arith.constant 0 : index
      %c0_58 = arith.constant 0 : index
      %63 = vector.load %arg5[%c0_56, %c0_57, %c0_58] : memref<1x8x286xf32, #tpu.memory_space<vmem>>, vector<1x8x286xf32>
      %64 = vector.shape_cast %63 : vector<1x8x286xf32> to vector<8x286xf32>
      %65 = vector.shape_cast %62 : vector<8x286xf32> to vector<1x8x286xf32>
      tpu.vector_store %arg5[%c0_56, %c0_57, %c0_58], %65 {strides = array<i32>} : memref<1x8x286xf32, #tpu.memory_space<vmem>>, vector<1x8x286xf32>,
    } else {
    }
    return
  }
  func.func @transform_0(%arg0: i32, %arg1: i32) -> (i32, i32, i32) {
    %c0_i32 = arith.constant 0 : i32
    %c0_i32_0 = arith.constant 0 : i32
    return %arg0, %arg1, %c0_i32 : i32, i32, i32
  }
  func.func @transform_1(%arg0: i32, %arg1: i32) -> (i32, i32, i32) {
    %c0_i32 = arith.constant 0 : i32
    %c0_i32_0 = arith.constant 0 : i32
    %c0_i32_1 = arith.constant 0 : i32
    return %c0_i32, %c0_i32_0, %arg1 : i32, i32, i32
  }
  func.func @transform_2(%arg0: i32, %arg1: i32) -> (i32, i32) {
    %c0_i32 = arith.constant 0 : i32
    %c0_i32_0 = arith.constant 0 : i32
    %c0_i32_1 = arith.constant 0 : i32
    return %c0_i32, %c0_i32_0 : i32, i32
  }
  func.func @transform_3(%arg0: i32, %arg1: i32) -> (i32, i32, i32) {
    %c0_i32 = arith.constant 0 : i32
    %c0_i32_0 = arith.constant 0 : i32
    %c0_i32_1 = arith.constant 0 : i32
    return %arg0, %c0_i32, %c0_i32_0 : i32, i32, i32
  }
}

</mosaic_0001>

<bundles_post_ra>
// kernel: tpu_custom_call.1
= control target key start
LH: loop header
LB: loop body
LE: loop exit
PB: predicated region body
PF: predicated region fallthrough
CT: control target
= control target key end

     0   :  { %8 = vsyncpa [#allocation4], 0  ;;  %s1433_s0 = inlined_call_operand.vmem [shape: bf16[2,4,324], index: 0, kind: input, shape index: {}]   ;;  %s1434_s1 = inlined_call_operand.vmem [shape: bf16[9,8,4], index: 1, kind: input, shape index: {}]   ;;  %s1435_s2 = inlined_call_operand.vmem [shape: f32[8,1], index: 2, kind: input, shape index: {}]   ;;  %s1436_s3 = inlined_call_operand.hbm [shape: f32[2,8,286], index: 3, kind: output, shape index: {}]  }
   0x1   :  { %10 = vsyncpa [#allocation4 + $0x1], 0  ;;  %s1225_s12 = smov 0   ;;  %s1227_s13 = smov 0  }
   0x2   :  { %s1229_s14 = smov 0   ;;  %s1231_s15 = smov 0  }
   0x3   :  { %s1233_s16 = smov 0   ;;  %s1235_s17 = smov 0  }
   0x4 LB: > { %s1003_s18 = sadd.s32 4294967295, %s1194_s17   ;;  %s1004_s19 = sadd.s32 4294967294, %s1194_s17   ;;  %s1194_s17 = sphi %s1235_s17, %s16_s17   ;;  %s1190_s16 = sphi %s1233_s16, %s1443_s16   ;;  %s1186_s15 = sphi %s1231_s15, %s1442_s15   ;;  %s1182_s14 = sphi %s1229_s14, %s1441_s14   ;;  %s1178_s13 = sphi %s1227_s13, %s1440_s13   ;;  %s1174_s12 = sphi %s1225_s12, %s1439_s12  }
   0x5   : > { %s28_s20 = sadd.s32 1, %s1190_s16  ;;  %s110_s21 = sadd.s32 1, %s1182_s14 }
   0x6   : > { %p30_p0 = scmp.ge.s32.totalorder %s28_s20, 2  ;;  %p120_p1 = scmp.ne.s32.totalorder %s1182_s14, %s1178_s13 }
   0x7   : > { %p121_p2 = scmp.eq.s32.totalorder %s1003_s18, 1  ;;  %p126_p3 = scmp.ne.s32.totalorder %s1178_s13, %s1174_s12 }
   0x8   : > { %s1445_s20 = smov (%p30_p0, %s28_s20), 0  ;;  %p127_p5 = scmp.eq.s32.totalorder %s1004_s19, 1 }
   0x9   : > { %p1265_p4 = por %p121_p2, %p120_p1  ;;  %s107_s23 = ssub.s32 %s1190_s16, %s1445_s20 }
   0xa   : > { %p1008_p6 = scmp.ge.s32.totalorder %s1194_s17, 1  ;;  %p108_p7 = scmp.eq.s32.totalorder %s107_s23, 0 }
   0xb   : > { %p1272_p8 = por %p127_p5, %p126_p3  ;;  %p167_p9 = scmp.lt.s32.totalorder %s1194_s17, 3 }
   0xc   : > { %s1278_s25 = scalar_select %p108_p7, %s1182_s14, %s110_s21  }
   0xd   : > { %p168_p10 = pnand %p1008_p6, %p167_p9 }
   0xe   : > { %p199_p11 = scmp.lt.s32.totalorder (!%p168_p10), %s1186_s15, 1  ;;  %s1196_s4 = smov (!%p168_p10), 127  }
   0xf   : > { %171 = sbr.rel (%p168_p10) target bundleno = 405 (0x195), region = 32  ;;  %s1197_s5 = smov (!%p168_p10), 126  }
  0x10   : > { %s1198_s6 = smov (!%p168_p10), 110   ;;  %s1199_s7 = smov (!%p168_p10), 109  }
  0x11   : > { %s1200_s10 = smov (!%p168_p10), 108   ;;  %s1201_s11 = smov (!%p168_p10), 92  }
  0x12   : > { %s1202_s18 = smov (!%p168_p10), 91   ;;  %s1203_s19 = smov (!%p168_p10), 90  }
  0x13   : > { %s196_s23 = sand.u32 (!%p168_p10), 1, %s1178_s13   ;;  %s1050_s28 = smul.u32 (!%p168_p10), 24, %s1186_s15 }
  0x14   : > { %s200_s26 = scalar_select %p199_p11, %s1186_s15, 1  ;;  %vm241_vm0 = vcmask 1041408   ;;  %v231_v25 = vld [vmem:[%s1434_s1] sm:$0xf]  ;;  %vm237_vm1 = vcmask 31744   ;;  %v1204_v43 = vmov 0  }
  0x15   : > { %v1013_v42 = vld [vmem:[%s1434_s1 + $0x4] sm:$0xf]  ;;  %1115 = vset.pattern.permute.xlu0 %v1204_v43  ;;  %vm307_vm2 = vcmask 1039360   ;;  %vm381_vm3 = vcmask 1031168   ;;  %vm455_vm4 = vcmask 900096   ;;  %vm529_vm5 = vcmask 891904  }
  0x16   : > { %s1049_s27 = smul.u32 6, %s200_s26  ;;  %v217_v44 = vld [vmem:[%s1435_s2] sm:$0xff]  ;;  %v1017_v62 = vld [vmem:[%s1434_s1 + $0x8] sm:$0xf]  ;;  %vm603_vm6 = vcmask 883712   ;;  %vm677_vm7 = vcmask 752640  }
  0x17   : > { %vm751_vm8 = vcmask 744448   ;;  %vm825_vm9 = vcmask 736256   ;;  %vm225_vm10 = vcmask 244736   ;;  %s1048_s26 = smul.u32 24, %s196_s23 }
  0x18   : > { %s1285_s30 = scalar_lea.vmem %s1433_s0, %s1049_s27 }
  0x19   : > { %v230_v0 = vld [vmem:[%s1285_s30] sm:$0x3f]  ;;  %s198_s27 = scalar_lea.vmem [#allocation3], %s1048_s26 }
  0x1a   : > { %233 = vst [vmem:[#allocation1] ss:$4 sm:$0xff] %v230_v0  ;;  %v290_v1 = vld [vmem:[%s1285_s30] sm:$0x3f]  ;;  %v1021_v0 = vld [vmem:[%s1434_s1 + $0xc] sm:$0xf] }
  0x1b   : > { %v364_v5 = vld [vmem:[%s1285_s30] sm:$0x3f] }
  0x1c   : > { %v438_v9 = vld [vmem:[%s1285_s30] sm:$0x3f] }
  0x1d   : > { %v512_v13 = vld [vmem:[%s1285_s30] sm:$0x3f] }
  0x1e   : > { %v586_v17 = vld [vmem:[%s1285_s30] sm:$0x3f] }
  0x1f   : > { %v660_v21 = vld [vmem:[%s1285_s30] sm:$0x3f] }
  0x20   : > { %v734_v28 = vld [vmem:[%s1285_s30] sm:$0x3f] }
  0x21   : > { %v234_v2 = vld.sshfl [vmem:[#allocation1] sm:$0xff pattern:$0x73625140]  ;;  %v235_v3 = vld.sshfl [vmem:[#allocation1 + $0x8] sm:$0xff pattern:$0x73625140] }
  0x22   : > { %v1289_v4 = vld.sshfl [vmem:[#allocation1 + $0x10] sm:$0xff pattern:$0x73625140]  ;;  %v242_v22 = vsel %vm241_vm0, %v234_v2, 0  ;;  %v244_v23 = vsel %vm241_vm0, %v235_v3, 0 }
  0x23   : > { %294 = vst [vmem:[#allocation1] ss:$4 sm:$0xff] %v290_v1  ;;  %255 = vmatpush.bf16.msra.mxu0 %v242_v22  ;;  %268 = vmatpush.bf16.msra.mxu1 %v244_v23  ;;  %v808_v32 = vld [vmem:[%s1285_s30] sm:$0x3f]  ;;  %v246_v39 = vsel %vm241_vm0, %v1289_v4, 0 }
  0x24   : > { %281 = vmatpush.bf16.msra.mxu2 %v246_v39 }
  0x26   : > { %1011 = vmatmul.msk.bf16.vlgmr.msra.gmra.mxu1 %vm237_vm1, %v231_v25  ;;  %1010 = vmatmul.msk.bf16.vlgmr.msra.gmra.mxu0 %vm237_vm1, %v231_v25 }
  0x27   : > { %1012 = vmatmul.msk.bf16.vlgmr.msra.gmra.mxu2 %vm237_vm1, %v231_v25 }
  0x2a   : > { %v295_v6 = vld.sshfl [vmem:[#allocation1] sm:$0xff pattern:$0x73625140]  ;;  %v297_v7 = vld.sshfl [vmem:[#allocation1 + $0x8] sm:$0xff pattern:$0x73625140] }
  0x2b   : > { %301 = vrot.lane.b32.xlu0 %v295_v6, %s1196_s4  ;;  %v299_v8 = vld.sshfl [vmem:[#allocation1 + $0x10] sm:$0xff pattern:$0x73625140] }
  0x2c   : > { %368 = vst [vmem:[#allocation1] ss:$4 sm:$0xff] %v364_v5  ;;  %305 = vrot.lane.b32.xlu2 %v299_v8, %s1196_s4 }
  0x33   : > { %303 = vrot.lane.b32.xlu0 %v297_v7, %s1196_s4  ;;  %v373_v10 = vld.sshfl [vmem:[#allocation1 + $0x10] sm:$0xff pattern:$0x73625140]  ;;  %v369_v11 = vld.sshfl [vmem:[#allocation1] sm:$0xff pattern:$0x73625140]  ;;  %s907_s4 = scalar_lea.hbm %s1436_s3, %s1050_s28 }
  0x34   : > { %375 = vrot.lane.b32.xlu1 %v369_v11, %s1197_s5  ;;  %v371_v12 = vld.sshfl [vmem:[#allocation1 + $0x8] sm:$0xff pattern:$0x73625140]  ;;  %379 = vrot.lane.b32.xlu2 %v373_v10, %s1197_s5 }
  0x35   : > { %442 = vst [vmem:[#allocation1] ss:$4 sm:$0xff] %v438_v9 }
  0x3c   : > { %377 = vrot.lane.b32.xlu1 %v371_v12, %s1197_s5  ;;  %v445_v14 = vld.sshfl [vmem:[#allocation1 + $0x8] sm:$0xff pattern:$0x73625140]  ;;  %v443_v15 = vld.sshfl [vmem:[#allocation1] sm:$0xff pattern:$0x73625140] }
  0x3d   : > { %451 = vrot.lane.b32.xlu0 %v445_v14, %s1198_s6  ;;  %v447_v16 = vld.sshfl [vmem:[#allocation1 + $0x10] sm:$0xff pattern:$0x73625140]  ;;  %449 = vrot.lane.b32.xlu2 %v443_v15, %s1198_s6  ;;  %s909_s5 = sshll.u32 %s198_s27, 4  ;;  %s910_s5 = int_to_ptr.vmem [resolvable:$true] %s909_s5 }
  0x3e   : > { %516 = vst [vmem:[#allocation1] ss:$4 sm:$0xff] %v512_v13  ;;  %v1025_v14 = vld [vmem:[%s1434_s1 + $0x10] sm:$0xf] }
  0x44   : > { %453 = vrot.lane.b32.xlu1 %v447_v16, %s1198_s6  ;;  %s911_s6 = sshll.u32 %s907_s4, 4  ;;  %s912_s6 = int_to_ptr.hbm [resolvable:$true] %s911_s6 }
  0x45   : > { %v521_v18 = vld.sshfl [vmem:[#allocation1 + $0x10] sm:$0xff pattern:$0x73625140]  ;;  %v519_v19 = vld.sshfl [vmem:[#allocation1 + $0x8] sm:$0xff pattern:$0x73625140] }
  0x46   : > { %527 = vrot.lane.b32.xlu0 %v521_v18, %s1199_s7  ;;  %v517_v20 = vld.sshfl [vmem:[#allocation1] sm:$0xff pattern:$0x73625140]  ;;  %525 = vrot.lane.b32.xlu2 %v519_v19, %s1199_s7  ;;  %s1130_s15 = sshra.s32 %s912_s6, 4  ;;  %s1131_s15 = int_to_ptr.hbm [resolvable:$true] %s1130_s15 }
  0x47   : > { %590 = vst [vmem:[#allocation1] ss:$4 sm:$0xff] %v586_v17  ;;  %s1132_s8 = scalar_lea.hbm %s1131_s15, 24  ;;  %p1137_p1 = scmp.lt.s32.totalorder %s1131_s15, %s1436_s3 }
  0x48   : > { %p1133_p12 = scmp.ne.s32.totalorder %s1131_s15, %s1132_s8 }
  0x4a   : > { %p1134_p13 = pnand %p1133_p12, %p1265_p4 }
  0x4c   : > { %523 = vrot.lane.b32.xlu1 %v517_v20, %s1199_s7  ;;  %s896_s7 = scalar_lea.sflag [#allocation4], %s196_s23  ;;  %p1135_p0 = pneg %p1134_p13 }
  0x4e   : > { %v595_v24 = vld.sshfl [vmem:[#allocation1 + $0x10] sm:$0xff pattern:$0x73625140]  ;;  %v593_v26 = vld.sshfl [vmem:[#allocation1 + $0x8] sm:$0xff pattern:$0x73625140] }
  0x4f   : > { %v591_v27 = vld.sshfl [vmem:[#allocation1] sm:$0xff pattern:$0x73625140] }
  0x50   : > { %597 = vrot.lane.b32.xlu0 %v591_v27, %s1200_s10  ;;  %664 = vst [vmem:[#allocation1] ss:$4 sm:$0xff] %v660_v21 }
  0x54   : > { %599 = vrot.lane.b32.xlu1 %v593_v26, %s1200_s10 }
  0x57   : > { %v667_v29 = vld.sshfl [vmem:[#allocation1 + $0x8] sm:$0xff pattern:$0x73625140]  ;;  %v669_v30 = vld.sshfl [vmem:[#allocation1 + $0x10] sm:$0xff pattern:$0x73625140] }
  0x58   : > { %673 = vrot.lane.b32.xlu0 %v667_v29, %s1201_s11  ;;  %v665_v31 = vld.sshfl [vmem:[#allocation1] sm:$0xff pattern:$0x73625140] }
  0x59   : > { %738 = vst [vmem:[#allocation1] ss:$4 sm:$0xff] %v734_v28  ;;  %671 = vrot.lane.b32.xlu2 %v665_v31, %s1201_s11  ;;  %v1029_v31 = vld [vmem:[%s1434_s1 + $0x14] sm:$0xf] }
  0x5c   : > { %601 = vrot.lane.b32.xlu1 %v595_v24, %s1200_s10 }
  0x60   : > { %v741_v33 = vld.sshfl [vmem:[#allocation1 + $0x8] sm:$0xff pattern:$0x73625140]  ;;  %v739_v34 = vld.sshfl [vmem:[#allocation1] sm:$0xff pattern:$0x73625140] }
  0x61   : > { %747 = vrot.lane.b32.xlu0 %v741_v33, %s1202_s18  ;;  %v743_v35 = vld.sshfl [vmem:[#allocation1 + $0x10] sm:$0xff pattern:$0x73625140]  ;;  %675 = vrot.lane.b32.xlu2 %v669_v30, %s1201_s11  ;;  %s1136_s11 = scalar_lea.hbm %s1436_s3, 48 }
  0x62   : > { %812 = vst [vmem:[#allocation1] ss:$4 sm:$0xff] %v808_v32  ;;  %p1138_p2 = scmp.lt.s32.totalorder %s1136_s11, %s1132_s8 }
  0x64   : > { %749 = vrot.lane.b32.xlu1 %v743_v35, %s1202_s18  ;;  %p1139_p3 = por %p1138_p2, %p1137_p1 }
  0x66   : > { %p1140_p5 = pnand %p1139_p3, %p1135_p0 }
  0x69   : > { %v817_v36 = vld.sshfl [vmem:[#allocation1 + $0x10] sm:$0xff pattern:$0x73625140]  ;;  %v813_v37 = vld.sshfl [vmem:[#allocation1] sm:$0xff pattern:$0x73625140]  ;;  %745 = vrot.lane.b32.xlu2 %v739_v34, %s1202_s18 }
  0x6a   : > { %823 = vrot.lane.b32.xlu0 %v817_v36, %s1203_s19  ;;  %v815_v38 = vld.sshfl [vmem:[#allocation1 + $0x8] sm:$0xff pattern:$0x73625140] }
  0x6c   : > { %819 = vrot.lane.b32.xlu1 %v813_v37, %s1203_s19 }
  0x71   : > { %821 = vrot.lane.b32.xlu2 %v815_v38, %s1203_s19 }
  0x72   : > { %220 = vperm.xlu0 %1115, %v217_v44  }
  0x86   : > { %v306_v40 = vpop.permute.xlu2 %305 }
  0x87   : > { %v320_v41 = vsel %vm241_vm0, %v306_v40, 0 }
  0x88   : > { %355 = vmatpush.bf16.msrb.mxu1 %v320_v41 }
  0x8b   : > { %1016 = vmatmul.msk.bf16.vlgmr.msrb.gmra.mxu1 %vm237_vm1, %v1013_v42 }
  0x8e   : > { %v380_v46 = vpop.permute.xlu2 %379 }
  0x8f   : > { %v394_v51 = vsel %vm241_vm0, %v380_v46, 0 }
  0x97   : > { %v450_v54 = vpop.permute.xlu2 %449 }
  0x9d   : > { %v302_v45 = vpop.permute.xlu0 %301 }
  0xa0   : > { %v526_v1 = vpop.permute.xlu2 %525 }
  0xa5   : > { %v304_v47 = vpop.permute.xlu0 %303 }
  0xa6   : > { %v376_v48 = vpop.permute.xlu1 %375  ;;  %v308_v49 = vsel %vm307_vm2, %v302_v45, %v304_v47  ;;  %v309_v50 = vsel %vm307_vm2, %v304_v47, %v306_v40  ;;  %v1037_v47 = vld [vmem:[%s1434_s1 + $0x1c] sm:$0xf] }
  0xa7   : > { %v314_v52 = vsel %vm241_vm0, %v308_v49, 0  ;;  %v317_v53 = vsel %vm241_vm0, %v309_v50, 0  ;;  %v257_v49 = vpop.f32.mrf.mxu0  ;;  %v270_v50 = vpop.f32.mrf.mxu1 }
  0xa8   : > { %329 = vmatpush.bf16.msra.mxu3 %v314_v52  ;;  %342 = vmatpush.bf16.msrb.mxu0 %v317_v53  ;;  %v1041_v53 = vld [vmem:[%s1434_s1 + $0x20] sm:$0xf] }
  0xab   : > { %1014 = vmatmul.msk.bf16.vlgmr.msra.gmra.mxu3 %vm237_vm1, %v1013_v42  ;;  %1015 = vmatmul.msk.bf16.vlgmr.msrb.gmra.mxu0 %vm237_vm1, %v1013_v42 }
  0xac   : > { %429 = vmatpush.bf16.msra.mxu0 %v394_v51 }
  0xae   : > { %v378_v55 = vpop.permute.xlu1 %377 }
  0xaf   : > { %v382_v56 = vsel %vm381_vm3, %v376_v48, %v378_v55  ;;  %v383_v57 = vsel %vm381_vm3, %v378_v55, %v380_v46  ;;  %v452_v58 = vpop.permute.xlu0 %451  ;;  %v1033_v46 = vld [vmem:[%s1434_s1 + $0x18] sm:$0xf]  ;;  %v259_v51 = vpop.f32.mrf.mxu0 }
  0xb0   : > { %v388_v59 = vsel %vm241_vm0, %v382_v56, 0  ;;  %v391_v60 = vsel %vm241_vm0, %v383_v57, 0  ;;  %v456_v61 = vsel %vm455_vm4, %v450_v54, %v452_v58  ;;  %v272_v52 = vpop.f32.mrf.mxu1  ;;  %v283_v54 = vpop.f32.mrf.mxu2 }
  0xb1   : > { %403 = vmatpush.bf16.msrb.mxu2 %v388_v59  ;;  %416 = vmatpush.bf16.msrb.mxu3 %v391_v60  ;;  %v462_v63 = vsel %vm241_vm0, %v456_v61, 0 }
  0xb2   : > { %477 = vmatpush.bf16.msra.mxu1 %v462_v63 }
  0xb3   : > { %v672_v10 = vpop.permute.xlu2 %671 }
  0xb4   : > { %1018 = vmatmul.msk.bf16.vlgmr.msrb.gmra.mxu2 %vm237_vm1, %v1017_v62 }
  0xb5   : > { %1022 = vmatmul.msk.bf16.vlgmr.msra.gmra.mxu1 %vm237_vm1, %v1021_v0 }
  0xb6   : > { %v454_v2 = vpop.permute.xlu1 %453 }
  0xb7   : > { %v457_v3 = vsel %vm455_vm4, %v452_v58, %v454_v2  ;;  %v468_v4 = vsel %vm241_vm0, %v454_v2, 0 }
  0xb8   : > { %v465_v5 = vsel %vm241_vm0, %v457_v3, 0  ;;  %503 = vmatpush.bf16.msra.mxu3 %v468_v4  ;;  %v528_v6 = vpop.permute.xlu0 %527  ;;  %v285_v56 = vpop.f32.mrf.mxu2 }
  0xb9   : > { %490 = vmatpush.bf16.msra.mxu2 %v465_v5  ;;  %v542_v7 = vsel %vm241_vm0, %v528_v6, 0  ;;  %v531_v8 = vsel %vm529_vm5, %v526_v1, %v528_v6 }
  0xba   : > { %v539_v9 = vsel %vm241_vm0, %v531_v8, 0 }
  0xbb   : > { %1019 = vmatmul.msk.bf16.vlgmr.msrb.gmra.mxu3 %vm237_vm1, %v1017_v62  ;;  %1020 = vmatmul.msk.bf16.vlgmr.msra.gmra.mxu0 %vm237_vm1, %v1017_v62  ;;  %v676_v18 = vpop.permute.xlu2 %675 }
  0xbc   : > { %564 = vmatpush.bf16.msrb.mxu1 %v539_v9  ;;  %v690_v28 = vsel %vm241_vm0, %v676_v18, 0 }
  0xbd   : > { %577 = vmatpush.bf16.msrb.mxu2 %v542_v7 }
  0xbe   : > { %v524_v11 = vpop.permute.xlu1 %523 }
  0xbf   : > { %v530_v12 = vsel %vm529_vm5, %v524_v11, %v526_v1 }
  0xc0   : > { %v536_v13 = vsel %vm241_vm0, %v530_v12, 0 }
  0xc1   : > { %551 = vmatpush.bf16.msrb.mxu0 %v536_v13 }
  0xc2   : > { %v598_v15 = vpop.permute.xlu0 %597 }
  0xc3   : > { %v746_v30 = vpop.permute.xlu2 %745 }
  0xc4   : > { %1023 = vmatmul.msk.bf16.vlgmr.msra.gmra.mxu2 %vm237_vm1, %v1021_v0 }
  0xc5   : > { %1027 = vmatmul.msk.bf16.vlgmr.msrb.gmra.mxu1 %vm237_vm1, %v1025_v14 }
  0xc6   : > { %v600_v16 = vpop.permute.xlu1 %599 }
  0xc7   : > { %v604_v17 = vsel %vm603_vm6, %v598_v15, %v600_v16 }
  0xc8   : > { %v610_v19 = vsel %vm241_vm0, %v604_v17, 0 }
  0xc9   : > { %625 = vmatpush.bf16.msrb.mxu3 %v610_v19 }
  0xca   : > { %v674_v20 = vpop.permute.xlu0 %673 }
  0xcb   : > { %1024 = vmatmul.msk.bf16.vlgmr.msra.gmra.mxu3 %vm237_vm1, %v1021_v0  ;;  %1026 = vmatmul.msk.bf16.vlgmr.msrb.gmra.mxu0 %vm237_vm1, %v1025_v14  ;;  %v678_v21 = vsel %vm677_vm7, %v672_v10, %v674_v20  ;;  %v679_v22 = vsel %vm677_vm7, %v674_v20, %v676_v18  ;;  %v822_v39 = vpop.permute.xlu2 %821 }
  0xcc   : > { %v684_v23 = vsel %vm241_vm0, %v678_v21, 0  ;;  %v687_v24 = vsel %vm241_vm0, %v679_v22, 0 }
  0xcd   : > { %699 = vmatpush.bf16.msra.mxu2 %v684_v23  ;;  %712 = vmatpush.bf16.msra.mxu3 %v687_v24 }
  0xce   : > { %v602_v25 = vpop.permute.xlu1 %601 }
  0xcf   : > { %v605_v26 = vsel %vm603_vm6, %v600_v16, %v602_v25  ;;  %v616_v27 = vsel %vm241_vm0, %v602_v25, 0 }
  0xd0   : > { %v613_v29 = vsel %vm241_vm0, %v605_v26, 0  ;;  %651 = vmatpush.bf16.msra.mxu1 %v616_v27 }
  0xd1   : > { %638 = vmatpush.bf16.msra.mxu0 %v613_v29 }
  0xd3   : > { %v748_v32 = vpop.permute.xlu0 %747 }
  0xd4   : > { %1028 = vmatmul.msk.bf16.vlgmr.msrb.gmra.mxu2 %vm237_vm1, %v1025_v14  ;;  %v752_v33 = vsel %vm751_vm8, %v746_v30, %v748_v32 }
  0xd5   : > { %725 = vmatpush.bf16.msrb.mxu0 %v690_v28  ;;  %1032 = vmatmul.msk.bf16.vlgmr.msra.gmra.mxu1 %vm237_vm1, %v1029_v31  ;;  %v758_v34 = vsel %vm241_vm0, %v752_v33, 0 }
  0xd6   : > { %773 = vmatpush.bf16.msrb.mxu1 %v758_v34  ;;  %v750_v35 = vpop.permute.xlu1 %749 }
  0xd7   : > { %v753_v36 = vsel %vm751_vm8, %v748_v32, %v750_v35  ;;  %v764_v38 = vsel %vm241_vm0, %v750_v35, 0 }
  0xd8   : > { %v761_v37 = vsel %vm241_vm0, %v753_v36, 0 }
  0xd9   : > { %786 = vmatpush.bf16.msrb.mxu2 %v761_v37 }
  0xdb   : > { %1030 = vmatmul.msk.bf16.vlgmr.msrb.gmra.mxu3 %vm237_vm1, %v1029_v31  ;;  %1031 = vmatmul.msk.bf16.vlgmr.msra.gmra.mxu0 %vm237_vm1, %v1029_v31 }
  0xdc   : > { %799 = vmatpush.bf16.msrb.mxu3 %v764_v38  ;;  %v824_v40 = vpop.permute.xlu0 %823 }
  0xdd   : > { %v827_v41 = vsel %vm825_vm9, %v822_v39, %v824_v40  ;;  %v838_v48 = vsel %vm241_vm0, %v824_v40, 0 }
  0xde   : > { %v835_v42 = vsel %vm241_vm0, %v827_v41, 0  ;;  %v820_v43 = vpop.permute.xlu1 %819 }
  0xdf   : > { %v826_v44 = vsel %vm825_vm9, %v820_v43, %v822_v39  ;;  %860 = vmatpush.bf16.msra.mxu1 %v835_v42 }
  0xe0   : > { %v832_v45 = vsel %vm241_vm0, %v826_v44, 0 }
  0xe1   : > { %847 = vmatpush.bf16.msra.mxu0 %v832_v45 }
  0xe4   : > { %1034 = vmatmul.msk.bf16.vlgmr.msra.gmra.mxu2 %vm237_vm1, %v1033_v46  ;;  %v221_v55 = vpop.permute.xlu0 %220 }
  0xe5   : > { %1038 = vmatmul.msk.bf16.vlgmr.msrb.gmra.mxu1 %vm237_vm1, %v1037_v47  ;;  %873 = vmatpush.bf16.msra.mxu2 %v838_v48  ;;  %226 = vst.msk [vmem:[#allocation2 + $0x10] sm:$0xff] %vm225_vm10, %v221_v55  ;;  %v287_v58 = vadd.f32 %v257_v49, %v221_v55  ;;  %v288_v62 = vadd.f32 %v270_v50, %v221_v55 }
  0xeb   : > { %1035 = vmatmul.msk.bf16.vlgmr.msra.gmra.mxu3 %vm237_vm1, %v1033_v46  ;;  %1036 = vmatmul.msk.bf16.vlgmr.msrb.gmra.mxu0 %vm237_vm1, %v1033_v46 }
  0xec   : > { %v229_v57 = vld [vmem:[#allocation2 + $0x10] sm:$0xff] }
  0xed   : > { %v289_v59 = vadd.f32 %v283_v54, %v229_v57 }
  0xf4   : > { %1039 = vmatmul.msk.bf16.vlgmr.msrb.gmra.mxu2 %vm237_vm1, %v1037_v47 }
  0xf5   : > { %1043 = vmatmul.msk.bf16.vlgmr.msra.gmra.mxu1 %vm237_vm1, %v1041_v53 }
  0xfb   : > { %1040 = vmatmul.msk.bf16.vlgmr.msrb.gmra.mxu3 %vm237_vm1, %v1037_v47  ;;  %1042 = vmatmul.msk.bf16.vlgmr.msra.gmra.mxu0 %vm237_vm1, %v1041_v53 }
 0x104   : > { %1044 = vmatmul.msk.bf16.vlgmr.msra.gmra.mxu2 %vm237_vm1, %v1041_v53 }
 0x108   : > { %v357_v60 = vpop.f32.mrf.mxu1 }
 0x109   : > { %v363_v61 = vadd.f32 %v357_v60, %v289_v59 }
 0x110   : > { %v359_v63 = vpop.f32.mrf.mxu1 }
 0x128   : > { %v344_v0 = vpop.f32.mrf.mxu0 }
 0x129   : > { %v362_v1 = vadd.f32 %v344_v0, %v288_v62 }
 0x12e   : > { %v331_v2 = vpop.f32.mrf.mxu3 }
 0x12f   : > { %v361_v31 = vadd.f32 %v331_v2, %v287_v58 }
 0x130   : > { %v346_v3 = vpop.f32.mrf.mxu0 }
 0x132   : > { %v479_v4 = vpop.f32.mrf.mxu1 }
 0x136   : > { %v333_v5 = vpop.f32.mrf.mxu3 }
 0x137   : > { %v405_v6 = vpop.f32.mrf.mxu2 }
 0x138   : > { %v431_v7 = vpop.f32.mrf.mxu0  ;;  %v435_v34 = vadd.f32 %v405_v6, %v361_v31 }
 0x139   : > { %v437_v8 = vadd.f32 %v431_v7, %v363_v61 }
 0x13a   : > { %v481_v9 = vpop.f32.mrf.mxu1  ;;  %v509_v37 = vadd.f32 %v479_v4, %v435_v34 }
 0x13e   : > { %v418_v10 = vpop.f32.mrf.mxu3 }
 0x13f   : > { %v407_v11 = vpop.f32.mrf.mxu2  ;;  %v436_v36 = vadd.f32 %v418_v10, %v362_v1 }
 0x140   : > { %v433_v12 = vpop.f32.mrf.mxu0 }
 0x142   : > { %v566_v13 = vpop.f32.mrf.mxu1 }
 0x146   : > { %v420_v14 = vpop.f32.mrf.mxu3 }
 0x147   : > { %v492_v15 = vpop.f32.mrf.mxu2 }
 0x148   : > { %v553_v16 = vpop.f32.mrf.mxu0  ;;  %v510_v38 = vadd.f32 %v492_v15, %v436_v36 }
 0x149   : > { %v583_v40 = vadd.f32 %v553_v16, %v509_v37 }
 0x14a   : > { %v568_v17 = vpop.f32.mrf.mxu1  ;;  %v584_v44 = vadd.f32 %v566_v13, %v510_v38 }
 0x14e   : > { %v505_v18 = vpop.f32.mrf.mxu3 }
 0x14f   : > { %v494_v19 = vpop.f32.mrf.mxu2  ;;  %v511_v57 = vadd.f32 %v505_v18, %v437_v8 }
 0x150   : > { %v555_v20 = vpop.f32.mrf.mxu0 }
 0x152   : > { %v653_v21 = vpop.f32.mrf.mxu1 }
 0x156   : > { %v507_v22 = vpop.f32.mrf.mxu3 }
 0x157   : > { %v579_v23 = vpop.f32.mrf.mxu2 }
 0x158   : > { %v640_v24 = vpop.f32.mrf.mxu0  ;;  %v585_v58 = vadd.f32 %v579_v23, %v511_v57 }
 0x159   : > { %v658_v47 = vadd.f32 %v640_v24, %v584_v44 }
 0x15a   : > { %v655_v25 = vpop.f32.mrf.mxu1  ;;  %v659_v62 = vadd.f32 %v653_v21, %v585_v58 }
 0x15e   : > { %v627_v26 = vpop.f32.mrf.mxu3 }
 0x15f   : > { %v581_v27 = vpop.f32.mrf.mxu2  ;;  %v657_v43 = vadd.f32 %v627_v26, %v583_v40 }
 0x160   : > { %v642_v28 = vpop.f32.mrf.mxu0 }
 0x162   : > { %v775_v29 = vpop.f32.mrf.mxu1 }
 0x166   : > { %v629_v30 = vpop.f32.mrf.mxu3 }
 0x167   : > { %v701_v32 = vpop.f32.mrf.mxu2 }
 0x168   : > { %v727_v33 = vpop.f32.mrf.mxu0  ;;  %v731_v46 = vadd.f32 %v701_v32, %v657_v43 }
 0x169   : > { %v733_v63 = vadd.f32 %v727_v33, %v659_v62 }
 0x16a   : > { %v777_v35 = vpop.f32.mrf.mxu1  ;;  %v805_v50 = vadd.f32 %v775_v29, %v731_v46 }
 0x16e   : > { %v714_v39 = vpop.f32.mrf.mxu3 }
 0x16f   : > { %v703_v41 = vpop.f32.mrf.mxu2  ;;  %v732_v48 = vadd.f32 %v714_v39, %v658_v47 }
 0x170   : > { %v729_v42 = vpop.f32.mrf.mxu0 }
 0x172   : > { %v862_v45 = vpop.f32.mrf.mxu1 }
 0x176   : > { %v716_v49 = vpop.f32.mrf.mxu3 }
 0x177   : > { %v788_v51 = vpop.f32.mrf.mxu2 }
 0x178   : > { %v806_v52 = vadd.f32 %v788_v51, %v732_v48  ;;  %v849_v53 = vpop.f32.mrf.mxu0 }
 0x179   : > { %v879_v54 = vadd.f32 %v849_v53, %v805_v50 }
 0x17a   : > { %v880_v55 = vadd.f32 %v862_v45, %v806_v52  ;;  %v864_v56 = vpop.f32.mrf.mxu1 }
 0x17b   : > { %892 = vst [vmem:[%s198_s27] sm:$0xff] %v879_v54 }
 0x17c   : > { %893 = vst [vmem:[%s198_s27 + $0x8] sm:$0xff] %v880_v55 }
 0x17e   : > { %v801_v59 = vpop.f32.mrf.mxu3 }
 0x17f   : > { %v790_v60 = vpop.f32.mrf.mxu2  ;;  %v807_v0 = vadd.f32 %v801_v59, %v733_v63 }
 0x180   : > { %v851_v61 = vpop.f32.mrf.mxu0 }
 0x186   : > { %v803_v1 = vpop.f32.mrf.mxu3 }
 0x187   : > { %v875_v2 = vpop.f32.mrf.mxu2 }
 0x188   : > { %v881_v3 = vadd.f32 %v875_v2, %v807_v0 }
 0x18a   : > { %885 = vst.msk [vmem:[#allocation2 + $0x10] sm:$0xff] %vm225_vm10, %v881_v3 }
 0x18f   : > { %v877_v4 = vpop.f32.mrf.mxu2 }
 0x191   : > { %v891_v5 = vld [vmem:[#allocation2 + $0x10] sm:$0xff] }
 0x192   : > { %894 = vst.msk [vmem:[%s198_s27 + $0x10] sm:$0xff] %vm225_vm10, %v891_v5 }
 0x193   : > { %1143 = shalt.err (!%p1140_p5)
}
 0x194   : > { %1051 = dma.vmem_to_hbm [thread:$0]  (%p1265_p4), %s910_s5, 384, %s912_s6, %s896_s7  }
 0x195 PF: > { %p1057_p6 = scmp.ge.s32.totalorder %s1194_s17, 2  ;;  %s923_s21 = sand.u32 1, %s1174_s12  }
 0x196   : > { %s924_s23 = scalar_lea.sflag [#allocation4], %s923_s21 }
 0x197   : > { %p1054_p7 = pnand %p1057_p6, %p1272_p8 }
 0x199   : > { %p1055_p9 = pneg %p1054_p7 }
 0x19b   : > { %1169 = dma.done.wait (%p1055_p9), %s924_s23, 384  }
 0x19c   : > { %1171 = vsyncadd (%p1055_p9), %s924_s23, 4294966912  ;;  %s16_s17 = sadd.s32 1, %s1194_s17   ;;  %s1439_s12 = smov %s1178_s13 }
 0x19d   : > { %p13_p10 = scmp.ge.s32.totalorder %s16_s17, 4   ;;  %s1440_s13 = smov %s1182_s14 }
 0x19e   : > { %s1441_s14 = smov %s1278_s25  ;;  %s1442_s15 = smov %s1190_s16 }
 0x19f   : > { %s1443_s16 = smov %s1445_s20  ;;  %15 = sbr.rel (!%p13_p10) target bundleno = 4 (0x4), region = 86 }
 0x1a4   :  { %930 = vsyncpa [#allocation4], 1 }
 0x1a5   :  { %932 = vsyncpa [#allocation4 + $0x1], 1 }

</bundles_post_ra>
